<compile_context>
chip_gen: v6e
topology: v6e:2x2x1
jax: 0.10.0
libtpu: 0.0.40
codegen_flags: <defaults>
</compile_context>

<pallas_src>
import functools

import jax
import jax.numpy as jnp
from jax import lax
from jax.experimental import pallas as pl
from jax.experimental.pallas import tpu as pltpu

COMPUTE_DTYPE = jnp.bfloat16  # MXU input dtype; accumulation is always f32.


# ---------------------------------------------------------------------------
# Fused attention kernel (query-tiled, flash-style key chunking, cached KV)
# ---------------------------------------------------------------------------
def _cross_attn_kernel(x_ref, cond_ref, wq_ref, wkv_ref, wo_ref, out_ref,
                       k_scratch, v_scratch, *, n_heads, head_dim,
                       lc, lc_chunk, lc_pad, n_chunks):
    hd_total = n_heads * head_dim
    tl = x_ref.shape[1]

    # --- K/V projection: once per batch.  The query-tile axis is the inner
    # "arbitrary" grid axis, so program_id(1) == 0 marks the first tile of a batch.
    @pl.when(pl.program_id(1) == 0)
    def _():
        if lc_pad > lc:  # zero padded tail so padded keys/values contribute nothing
            k_scratch[...] = jnp.zeros_like(k_scratch)
            v_scratch[...] = jnp.zeros_like(v_scratch)
        c = cond_ref[0].astype(COMPUTE_DTYPE)                       # [Lc, Dc]
        kv = jnp.dot(c, wkv_ref[...],
                     preferred_element_type=jnp.float32)            # [Lc, 2*H*hd]
        k = kv[:, :hd_total].reshape(lc, n_heads, head_dim)
        v = kv[:, hd_total:].reshape(lc, n_heads, head_dim)
        # Head-major cache so the inner loop slices need no per-chunk relayout.
        k_scratch[:, 0:lc, :] = jnp.transpose(k, (1, 0, 2)).astype(COMPUTE_DTYPE)
        v_scratch[:, 0:lc, :] = jnp.transpose(v, (1, 0, 2)).astype(COMPUTE_DTYPE)

    # --- Q projection for this query tile (1/sqrt(hd) folded into wq host-side).
    xq = x_ref[0].astype(COMPUTE_DTYPE)                             # [TL, Dm]
    q = jnp.dot(xq, wq_ref[...], preferred_element_type=jnp.float32)
    qh = jnp.transpose(q.reshape(tl, n_heads, head_dim),
                       (1, 0, 2)).astype(COMPUTE_DTYPE)             # [H, TL, hd]

    # --- Flash-style online softmax over key chunks.
    def chunk_body(j, carry):
        m_i, l_i, acc = carry
        if n_chunks == 1:
            k_blk = k_scratch[...]                                  # [H, Lc, hd]
            v_blk = v_scratch[...]
        else:
            start = pl.multiple_of(j * lc_chunk, lc_chunk)
            k_blk = k_scratch[:, pl.ds(start, lc_chunk), :]         # [H, C, hd]
            v_blk = v_scratch[:, pl.ds(start, lc_chunk), :]
        s = jnp.einsum("hld,hcd->hlc", qh, k_blk,
                       preferred_element_type=jnp.float32)          # [H, TL, C] f32
        if lc_pad > lc:
            key_idx = j * lc_chunk + lax.broadcasted_iota(
                jnp.int32, (1, 1, lc_chunk), 2)
            s = jnp.where(key_idx < lc, s, -jnp.inf)
        m_new = jnp.maximum(m_i, jnp.max(s, axis=-1, keepdims=True))
        alpha = jnp.exp(m_i - m_new)
        p = jnp.exp(s - m_new)                                      # f32 (v5e-safe)
        l_new = alpha * l_i + jnp.sum(p, axis=-1, keepdims=True)
        acc_new = alpha * acc + jnp.einsum(
            "hlc,hcd->hld", p.astype(COMPUTE_DTYPE), v_blk,
            preferred_element_type=jnp.float32)                     # [H, TL, hd]
        return m_new, l_new, acc_new

    carry0 = (jnp.full((n_heads, tl, 1), -jnp.inf, jnp.float32),
              jnp.zeros((n_heads, tl, 1), jnp.float32),
              jnp.zeros((n_heads, tl, head_dim), jnp.float32))
    if n_chunks == 1:
        _, l_fin, acc = chunk_body(0, carry0)
    else:
        _, l_fin, acc = lax.fori_loop(0, n_chunks, chunk_body, carry0,
                                      unroll=n_chunks <= 8)

    # Deferred softmax normalisation on the small accumulator (EUP vrcp).
    acc = acc * pl.reciprocal(l_fin, approx=True)                   # [H, TL, hd]
    attn = jnp.transpose(acc, (1, 0, 2)).reshape(tl, hd_total)      # [TL, H*hd]
    out = jnp.dot(attn.astype(COMPUTE_DTYPE), wo_ref[...],
                  preferred_element_type=jnp.float32)               # [TL, Dm]
    out_ref[0] = out.astype(out_ref.dtype)


# ---------------------------------------------------------------------------
# Tiling / VMEM sizing helpers
# ---------------------------------------------------------------------------
def _pick_lc_chunk(n_heads, tl, lc, budget_bytes):
    """Key-chunk size: s and p ([H, TL, C] f32 each) live simultaneously."""
    max_chunk = budget_bytes // (2 * 4 * n_heads * tl)
    max_chunk = max(256, (max_chunk // 256) * 256)   # 256-align for 256x256 MXU
    if lc <= max_chunk:
        return lc, lc
    n_chunks = -(-lc // max_chunk)
    return max_chunk, n_chunks * max_chunk


def _vmem_capacity_bytes():
    try:
        return int(pltpu.get_tpu_info().vmem_capacity_bytes)
    except Exception:  # conservative fallback (v7x-sized)
        return 64 << 20


def _vmem_limit_bytes(est_bytes):
    cap = _vmem_capacity_bytes()
    want = int(est_bytes * 1.4) + (8 << 20)               # pipeline / compiler headroom
    hi = max(32 << 20, cap - (12 << 20))                  # leave room for internal scratch
    return int(min(max(want, 32 << 20), hi))


# ---------------------------------------------------------------------------
# Wrapper (mirrors CrossAttnBlock.forward; weights stored as [in, out])
# ---------------------------------------------------------------------------
def cross_attn_block(x, cond, wq, wk, wv, wo, *, n_heads, head_dim,
                     l_tile=256, score_budget_bytes=8 << 20):
    B, L, Dm = x.shape
    hd_total = n_heads * head_dim
    scale = float(head_dim) ** -0.5

    if cond is None:          # self-attention: K/V come from x itself
        cond = x
    _, Lc, Dc = cond.shape

    wq_c = (wq * scale).astype(COMPUTE_DTYPE)                         # [Dm, H*hd]
    wkv_c = jnp.concatenate([wk, wv], axis=1).astype(COMPUTE_DTYPE)   # [Dc, 2*H*hd]
    wo_c = wo.astype(COMPUTE_DTYPE)                                   # [H*hd, Dm]

    tl = L if L <= l_tile else l_tile
    n_l = -(-L // tl)
    lc_chunk, lc_pad = _pick_lc_chunk(n_heads, tl, Lc, score_budget_bytes)
    n_chunks = lc_pad // lc_chunk

    kernel = functools.partial(
        _cross_attn_kernel, n_heads=n_heads, head_dim=head_dim,
        lc=Lc, lc_chunk=lc_chunk, lc_pad=lc_pad, n_chunks=n_chunks)

    # VMEM budget: double-buffered blocks + resident weights + KV cache + f32 live set.
    x_isz = jnp.dtype(x.dtype).itemsize
    c_isz = jnp.dtype(cond.dtype).itemsize
    weight_bytes = 2 * 2 * (Dm * hd_total + Dc * 2 * hd_total + hd_total * Dm)
    block_bytes = 2 * (2 * tl * Dm * x_isz + Lc * Dc * c_isz)
    kv_cache_bytes = 2 * 2 * lc_pad * hd_total
    interm_bytes = 4 * (Lc * 2 * hd_total + 2 * tl * hd_total
                        + 2 * n_heads * tl * lc_chunk + 2 * tl * Dm)
    vmem_limit = _vmem_limit_bytes(weight_bytes + block_bytes
                                   + kv_cache_bytes + interm_bytes)

    return pl.pallas_call(
        kernel,
        out_shape=jax.ShapeDtypeStruct((B, L, Dm), x.dtype),
        grid=(B, n_l),
        in_specs=[
            pl.BlockSpec((1, tl, Dm), lambda b, l: (b, l, 0)),        # query tile
            pl.BlockSpec((1, Lc, Dc), lambda b, l: (b, 0, 0)),        # cond (per batch)
            pl.BlockSpec((Dm, hd_total), lambda b, l: (0, 0)),        # Wq (scaled)
            pl.BlockSpec((Dc, 2 * hd_total), lambda b, l: (0, 0)),    # Wk|Wv fused
            pl.BlockSpec((hd_total, Dm), lambda b, l: (0, 0)),        # Wo
        ],
        out_specs=pl.BlockSpec((1, tl, Dm), lambda b, l: (b, l, 0)),
        scratch_shapes=[
            pltpu.VMEM((n_heads, lc_pad, head_dim), COMPUTE_DTYPE),   # cached K
            pltpu.VMEM((n_heads, lc_pad, head_dim), COMPUTE_DTYPE),   # cached V
        ],
        compiler_params=pltpu.CompilerParams(
            # batch axis shards across TCs (v7x); query-tile axis must stay
            # sequential so the per-batch KV cache in scratch is valid.
            dimension_semantics=("parallel", "arbitrary"),
            vmem_limit_bytes=vmem_limit),
    )(x, cond, wq_c, wkv_c, wo_c)


# ---------------------------------------------------------------------------
# Pure-JAX f32 reference (mirrors the PyTorch normal_attention path)
# ---------------------------------------------------------------------------
def reference_forward(x, cond, wq, wk, wv, wo, *, n_heads, head_dim):
    if cond is None:
        cond = x
    q = x @ wq
    k = cond @ wk
    v = cond @ wv
    B, L, _ = q.shape
    Lc = k.shape[1]
    q = q.reshape(B, L, n_heads, head_dim)
    k = k.reshape(B, Lc, n_heads, head_dim)
    v = v.reshape(B, Lc, n_heads, head_dim)
    s = jnp.einsum("bihd,bjhd->bhij", q, k) * head_dim ** (-0.5)
    a = jax.nn.softmax(s, axis=-1)
    o = jnp.einsum("bhij,bjhd->bihd", a, v).reshape(B, L, n_heads * head_dim)
    return o @ wo


# ---------------------------------------------------------------------------
# Demo / verification
# ---------------------------------------------------------------------------
if __name__ == "__main__":
    B, L, Lc = 2, 8, 6
    model_dim, cond_dim, head_dim, n_heads = 32, 16, 8, 4
    hd_total = head_dim * n_heads

    key = jax.random.PRNGKey(0)
    ks = jax.random.split(key, 10)

    def w(k, fan_in, fan_out):
        return jax.random.normal(k, (fan_in, fan_out), jnp.float32) * fan_in ** -0.5

    x = jax.random.normal(ks[0], (B, L, model_dim), jnp.float32)
    cond = jax.random.normal(ks[1], (B, Lc, cond_dim), jnp.float32)

    # CrossAttnBlock(model_dim, cond_dim, head_dim, n_heads) — cross-attention call.
    wq_x, wk_x, wv_x, wo_x = (w(ks[2], model_dim, hd_total),
                              w(ks[3], cond_dim, hd_total),
                              w(ks[4], cond_dim, hd_total),
                              w(ks[5], hd_total, model_dim))
    # CrossAttnBlock(model_dim, model_dim, head_dim, n_heads) — self-attn (cond=None).
    wq_s, wk_s, wv_s, wo_s = (w(ks[6], model_dim, hd_total),
                              w(ks[7], model_dim, hd_total),
                              w(ks[8], model_dim, hd_total),
                              w(ks[9], hd_total, model_dim))

    run = jax.jit(functools.partial(cross_attn_block,
                                    n_heads=n_heads, head_dim=head_dim))

    out_cross = jax.block_until_ready(run(x, cond, wq_x, wk_x, wv_x, wo_x))
    out_self = jax.block_until_ready(run(x, None, wq_s, wk_s, wv_s, wo_s))

    ref_cross = reference_forward(x, cond, wq_x, wk_x, wv_x, wo_x,
                                  n_heads=n_heads, head_dim=head_dim)
    ref_self = reference_forward(x, None, wq_s, wk_s, wv_s, wo_s,
                                 n_heads=n_heads, head_dim=head_dim)

    assert out_cross.shape == (B, L, model_dim)
    assert out_self.shape == (B, L, model_dim)
    # bf16 MXU inputs (f32 accumulation) + approx reciprocal -> loosened tolerance.
    assert jnp.allclose(out_cross, ref_cross, rtol=5e-2, atol=5e-2), \
        float(jnp.max(jnp.abs(out_cross - ref_cross)))
    assert jnp.allclose(out_self, ref_self, rtol=5e-2, atol=5e-2), \
        float(jnp.max(jnp.abs(out_self - ref_self)))

    print("KERNEL_OK")
</pallas_src>

<mosaic_0001>
module attributes {stable_mosaic.version = 11 : i64} {
  func.func @_cross_attn_kernel(%arg0: i32, %arg1: i32, %arg2: memref<1x8x32xf32, #tpu.memory_space<vmem>>, %arg3: memref<1x6x16xf32, #tpu.memory_space<vmem>>, %arg4: memref<32x32xbf16, #tpu.memory_space<vmem>>, %arg5: memref<16x64xbf16, #tpu.memory_space<vmem>>, %arg6: memref<32x32xbf16, #tpu.memory_space<vmem>>, %arg7: memref<1x8x32xf32, #tpu.memory_space<vmem>>, %arg8: memref<4x6x8xbf16, #tpu.memory_space<vmem>>, %arg9: memref<4x6x8xbf16, #tpu.memory_space<vmem>>) attributes {dimension_semantics = [#tpu.dimension_semantics<parallel>, #tpu.dimension_semantics<arbitrary>], iteration_bounds = array<i64: 2, 1>, scalar_prefetch = 0 : i64, scratch_operands = 2 : i64, tpu.core_type = #tpu.core_type<tc>, window_params = [{transform_indices = @transform_0, window_bounds = array<i64: 1, 8, 32>}, {transform_indices = @transform_1, window_bounds = array<i64: 1, 6, 16>}, {pipeline_mode = #tpu.pipeline_mode<synchronous>, transform_indices = @transform_2, window_bounds = array<i64: 32, 32>}, {pipeline_mode = #tpu.pipeline_mode<synchronous>, transform_indices = @transform_3, window_bounds = array<i64: 16, 64>}, {pipeline_mode = #tpu.pipeline_mode<synchronous>, transform_indices = @transform_4, window_bounds = array<i64: 32, 32>}, {transform_indices = @transform_5, window_bounds = array<i64: 1, 8, 32>}]} {
    %c0_i32 = arith.constant 0 : i32
    %0 = arith.cmpi eq, %arg1, %c0_i32 : i32
    %1 = arith.extui %0 : i1 to i32
    %c0_i32_0 = arith.constant 0 : i32
    %2 = arith.cmpi ne, %1, %c0_i32_0 : i32
    scf.if %2 {
      %c0_24 = arith.constant 0 : index
      %c0_25 = arith.constant 0 : index
      %c0_26 = arith.constant 0 : index
      %45 = vector.load %arg3[%c0_24, %c0_25, %c0_26] : memref<1x6x16xf32, #tpu.memory_space<vmem>>, vector<1x6x16xf32>
      %46 = vector.shape_cast %45 : vector<1x6x16xf32> to vector<6x16xf32>
      %47 = arith.truncf %46 : vector<6x16xf32> to vector<6x16xbf16>
      %c0_27 = arith.constant 0 : index
      %c0_28 = arith.constant 0 : index
      %48 = vector.load %arg5[%c0_27, %c0_28] : memref<16x64xbf16, #tpu.memory_space<vmem>>, vector<16x64xbf16>
      %cst_29 = arith.constant dense<0.000000e+00> : vector<6x64xf32>
      %49 = tpu.matmul %47, %48, %cst_29 {dimension_numbers = #tpu.dot_dimension_numbers<[1], [0], [0], [1], [0, 0, 1, 1], [], []>} : vector<6x16xbf16>, vector<16x64xbf16>, vector<6x64xf32> -> vector<6x64xf32>
      %50 = vector.extract_strided_slice %49 {offsets = [0, 0], sizes = [6, 32], strides = [1, 1]} : vector<6x64xf32> to vector<6x32xf32>
      %51 = vector.shape_cast %50 : vector<6x32xf32> to vector<6x4x8xf32>
      %52 = vector.extract_strided_slice %49 {offsets = [0, 32], sizes = [6, 32], strides = [1, 1]} : vector<6x64xf32> to vector<6x32xf32>
      %53 = vector.shape_cast %52 : vector<6x32xf32> to vector<6x4x8xf32>
      %54 = tpu.transpose %51, [1, 0, 2] : vector<6x4x8xf32> -> vector<4x6x8xf32>
      %55 = arith.truncf %54 : vector<4x6x8xf32> to vector<4x6x8xbf16>
      %c0_30 = arith.constant 0 : index
      %c0_31 = arith.constant 0 : index
      %c0_32 = arith.constant 0 : index
      %56 = vector.load %arg8[%c0_30, %c0_31, %c0_32] : memref<4x6x8xbf16, #tpu.memory_space<vmem>>, vector<4x6x8xbf16>
      tpu.vector_store %arg8[%c0_30, %c0_31, %c0_32], %55 {strides = array<i32>} : memref<4x6x8xbf16, #tpu.memory_space<vmem>>, vector<4x6x8xbf16>,
      %57 = tpu.transpose %53, [1, 0, 2] : vector<6x4x8xf32> -> vector<4x6x8xf32>
      %58 = arith.truncf %57 : vector<4x6x8xf32> to vector<4x6x8xbf16>
      %c0_33 = arith.constant 0 : index
      %c0_34 = arith.constant 0 : index
      %c0_35 = arith.constant 0 : index
      %59 = vector.load %arg9[%c0_33, %c0_34, %c0_35] : memref<4x6x8xbf16, #tpu.memory_space<vmem>>, vector<4x6x8xbf16>
      tpu.vector_store %arg9[%c0_33, %c0_34, %c0_35], %58 {strides = array<i32>} : memref<4x6x8xbf16, #tpu.memory_space<vmem>>, vector<4x6x8xbf16>,
    } else {
    }
    %c0 = arith.constant 0 : index
    %c0_1 = arith.constant 0 : index
    %c0_2 = arith.constant 0 : index
    %3 = vector.load %arg2[%c0, %c0_1, %c0_2] : memref<1x8x32xf32, #tpu.memory_space<vmem>>, vector<1x8x32xf32>
    %4 = vector.shape_cast %3 : vector<1x8x32xf32> to vector<8x32xf32>
    %5 = arith.truncf %4 : vector<8x32xf32> to vector<8x32xbf16>
    %c0_3 = arith.constant 0 : index
    %c0_4 = arith.constant 0 : index
    %6 = vector.load %arg4[%c0_3, %c0_4] : memref<32x32xbf16, #tpu.memory_space<vmem>>, vector<32x32xbf16>
    %cst = arith.constant dense<0.000000e+00> : vector<8x32xf32>
    %7 = tpu.matmul %5, %6, %cst {dimension_numbers = #tpu.dot_dimension_numbers<[1], [0], [0], [1], [0, 0, 1, 1], [], []>} : vector<8x32xbf16>, vector<32x32xbf16>, vector<8x32xf32> -> vector<8x32xf32>
    %8 = vector.shape_cast %7 : vector<8x32xf32> to vector<8x4x8xf32>
    %9 = tpu.transpose %8, [1, 0, 2] : vector<8x4x8xf32> -> vector<4x8x8xf32>
    %10 = arith.truncf %9 : vector<4x8x8xf32> to vector<4x8x8xbf16>
    %cst_5 = arith.constant 0xFF800000 : f32
    %11 = vector.broadcast %cst_5 : f32 to vector<4x8x1xf32>
    %cst_6 = arith.constant 0.000000e+00 : f32
    %12 = vector.broadcast %cst_6 : f32 to vector<4x8x1xf32>
    %cst_7 = arith.constant 0.000000e+00 : f32
    %13 = vector.broadcast %cst_7 : f32 to vector<4x8x8xf32>
    %c0_8 = arith.constant 0 : index
    %c0_9 = arith.constant 0 : index
    %c0_10 = arith.constant 0 : index
    %14 = vector.load %arg8[%c0_8, %c0_9, %c0_10] : memref<4x6x8xbf16, #tpu.memory_space<vmem>>, vector<4x6x8xbf16>
    %c0_11 = arith.constant 0 : index
    %c0_12 = arith.constant 0 : index
    %c0_13 = arith.constant 0 : index
    %15 = vector.load %arg9[%c0_11, %c0_12, %c0_13] : memref<4x6x8xbf16, #tpu.memory_space<vmem>>, vector<4x6x8xbf16>
    "tpu.trace_start"() <{level = 10 : i32, message = "hld,hcd->hlc"}> : () -> ()
    %cst_14 = arith.constant dense<0.000000e+00> : vector<4x8x6xf32>
    %16 = tpu.matmul %10, %14, %cst_14 {dimension_numbers = #tpu.dot_dimension_numbers<[2], [2], [1], [1], [0, 0, 0, 1, 1, 1], [0], [0]>} : vector<4x8x8xbf16>, vector<4x6x8xbf16>, vector<4x8x6xf32> -> vector<4x8x6xf32>
    "tpu.trace_stop"() : () -> ()
    %cst_15 = arith.constant dense<0xFF800000> : vector<4x8xf32>
    %17 = vector.multi_reduction <maximumf>, %16, %cst_15 [2] : vector<4x8x6xf32> to vector<4x8xf32>
    %18 = vector.shape_cast %17 : vector<4x8xf32> to vector<4x8x1xf32>
    %19 = arith.maximumf %11, %18 : vector<4x8x1xf32>
    %20 = arith.subf %11, %19 : vector<4x8x1xf32>
    %21 = math.exp %20 : vector<4x8x1xf32>
    %22 = vector.broadcast %19 : vector<4x8x1xf32> to vector<4x8x6xf32>
    %23 = arith.subf %16, %22 : vector<4x8x6xf32>
    %24 = math.exp %23 : vector<4x8x6xf32>
    %25 = arith.mulf %21, %12 : vector<4x8x1xf32>
    %cst_16 = arith.constant dense<0.000000e+00> : vector<4x8xf32>
    %26 = vector.multi_reduction <add>, %24, %cst_16 [2] : vector<4x8x6xf32> to vector<4x8xf32>
    %27 = vector.shape_cast %26 : vector<4x8xf32> to vector<4x8x1xf32>
    %28 = arith.addf %25, %27 : vector<4x8x1xf32>
    %29 = vector.broadcast %21 : vector<4x8x1xf32> to vector<4x8x8xf32>
    %30 = arith.mulf %29, %13 : vector<4x8x8xf32>
    %31 = arith.truncf %24 : vector<4x8x6xf32> to vector<4x8x6xbf16>
    "tpu.trace_start"() <{level = 10 : i32, message = "hlc,hcd->hld"}> : () -> ()
    %cst_17 = arith.constant dense<0.000000e+00> : vector<4x8x8xf32>
    %32 = tpu.matmul %31, %15, %cst_17 {dimension_numbers = #tpu.dot_dimension_numbers<[2], [1], [1], [2], [0, 0, 0, 1, 1, 2], [0], [0]>} : vector<4x8x6xbf16>, vector<4x6x8xbf16>, vector<4x8x8xf32> -> vector<4x8x8xf32>
    "tpu.trace_stop"() : () -> ()
    %33 = arith.addf %30, %32 : vector<4x8x8xf32>
    %34 = tpu.reciprocal %28 {approx = true} : vector<4x8x1xf32> -> vector<4x8x1xf32>
    %35 = vector.broadcast %34 : vector<4x8x1xf32> to vector<4x8x8xf32>
    %36 = arith.mulf %33, %35 : vector<4x8x8xf32>
    %37 = tpu.transpose %36, [1, 0, 2] : vector<4x8x8xf32> -> vector<8x4x8xf32>
    %38 = vector.shape_cast %37 : vector<8x4x8xf32> to vector<8x32xf32>
    %39 = arith.truncf %38 : vector<8x32xf32> to vector<8x32xbf16>
    %c0_18 = arith.constant 0 : index
    %c0_19 = arith.constant 0 : index
    %40 = vector.load %arg6[%c0_18, %c0_19] : memref<32x32xbf16, #tpu.memory_space<vmem>>, vector<32x32xbf16>
    %cst_20 = arith.constant dense<0.000000e+00> : vector<8x32xf32>
    %41 = tpu.matmul %39, %40, %cst_20 {dimension_numbers = #tpu.dot_dimension_numbers<[1], [0], [0], [1], [0, 0, 1, 1], [], []>} : vector<8x32xbf16>, vector<32x32xbf16>, vector<8x32xf32> -> vector<8x32xf32>
    %c0_21 = arith.constant 0 : index
    %c0_22 = arith.constant 0 : index
    %c0_23 = arith.constant 0 : index
    %42 = vector.load %arg7[%c0_21, %c0_22, %c0_23] : memref<1x8x32xf32, #tpu.memory_space<vmem>>, vector<1x8x32xf32>
    %43 = vector.shape_cast %42 : vector<1x8x32xf32> to vector<8x32xf32>
    %44 = vector.shape_cast %41 : vector<8x32xf32> to vector<1x8x32xf32>
    tpu.vector_store %arg7[%c0_21, %c0_22, %c0_23], %44 {strides = array<i32>} : memref<1x8x32xf32, #tpu.memory_space<vmem>>, vector<1x8x32xf32>,
    return
  }
  func.func @transform_0(%arg0: i32, %arg1: i32) -> (i32, i32, i32) {
    %c0_i32 = arith.constant 0 : i32
    %c0_i32_0 = arith.constant 0 : i32
    return %arg0, %arg1, %c0_i32 : i32, i32, i32
  }
  func.func @transform_1(%arg0: i32, %arg1: i32) -> (i32, i32, i32) {
    %c0_i32 = arith.constant 0 : i32
    %c0_i32_0 = arith.constant 0 : i32
    %c0_i32_1 = arith.constant 0 : i32
    return %arg0, %c0_i32, %c0_i32_0 : i32, i32, i32
  }
  func.func @transform_2(%arg0: i32, %arg1: i32) -> (i32, i32) {
    %c0_i32 = arith.constant 0 : i32
    %c0_i32_0 = arith.constant 0 : i32
    %c0_i32_1 = arith.constant 0 : i32
    return %c0_i32, %c0_i32_0 : i32, i32
  }
  func.func @transform_3(%arg0: i32, %arg1: i32) -> (i32, i32) {
    %c0_i32 = arith.constant 0 : i32
    %c0_i32_0 = arith.constant 0 : i32
    %c0_i32_1 = arith.constant 0 : i32
    return %c0_i32, %c0_i32_0 : i32, i32
  }
  func.func @transform_4(%arg0: i32, %arg1: i32) -> (i32, i32) {
    %c0_i32 = arith.constant 0 : i32
    %c0_i32_0 = arith.constant 0 : i32
    %c0_i32_1 = arith.constant 0 : i32
    return %c0_i32, %c0_i32_0 : i32, i32
  }
  func.func @transform_5(%arg0: i32, %arg1: i32) -> (i32, i32, i32) {
    %c0_i32 = arith.constant 0 : i32
    %c0_i32_0 = arith.constant 0 : i32
    return %arg0, %arg1, %c0_i32 : i32, i32, i32
  }
}

</mosaic_0001>

<bundles_post_ra>
// kernel: cross_attn_block.1
= control target key start
LH: loop header
LB: loop body
LE: loop exit
PB: predicated region body
PF: predicated region fallthrough
CT: control target
= control target key end

     0   :  { %10 = vsyncpa [#allocation5], 0  ;;  %s2198_s0 = inlined_call_operand.vmem [shape: f32[2,8,32], index: 0, kind: input, shape index: {}]   ;;  %s2199_s1 = inlined_call_operand.vmem [shape: f32[2,6,16], index: 1, kind: input, shape index: {}]   ;;  %s2200_s2 = inlined_call_operand.vmem [shape: bf16[32,32], index: 2, kind: input, shape index: {}]   ;;  %s2201_s3 = inlined_call_operand.vmem [shape: bf16[16,64], index: 3, kind: input, shape index: {}]   ;;  %s2202_s4 = inlined_call_operand.vmem [shape: bf16[32,32], index: 4, kind: input, shape index: {}]   ;;  %s2203_s5 = inlined_call_operand.hbm [shape: f32[2,8,32], index: 5, kind: output, shape index: {}]  }
   0x1   :  { %12 = vsyncpa [#allocation5 + $0x1], 0  ;;  %s1928_s18 = smov 0   ;;  %s1930_s19 = smov 0  }
   0x2   :  { %s1932_s20 = smov 0   ;;  %s1934_s21 = smov 0  }
   0x3   :  { %s1936_s22 = smov 0   ;;  %s1938_s23 = smov 0  }
   0x4 LB: > { %s1585_s24 = sadd.s32 4294967295, %s1884_s23   ;;  %s1586_s25 = sadd.s32 4294967294, %s1884_s23   ;;  %s1884_s23 = sphi %s1938_s23, %s18_s23   ;;  %s1880_s22 = sphi %s1936_s22, %s2210_s22   ;;  %s1876_s21 = sphi %s1934_s21, %s2209_s21   ;;  %s1872_s20 = sphi %s1932_s20, %s2208_s20   ;;  %s1868_s19 = sphi %s1930_s19, %s2207_s19   ;;  %s1864_s18 = sphi %s1928_s18, %s2206_s18  }
   0x5   : > { %s30_s26 = sadd.s32 1, %s1880_s22  ;;  %s156_s27 = sadd.s32 1, %s1872_s20 }
   0x6   : > { %p32_p0 = scmp.ge.s32.totalorder %s30_s26, 2  ;;  %p166_p1 = scmp.ne.s32.totalorder %s1872_s20, %s1868_s19 }
   0x7   : > { %p167_p2 = scmp.eq.s32.totalorder %s1585_s24, 1  ;;  %p172_p3 = scmp.ne.s32.totalorder %s1868_s19, %s1864_s18 }
   0x8   : > { %s2212_s26 = smov (%p32_p0, %s30_s26), 0  ;;  %p173_p5 = scmp.eq.s32.totalorder %s1586_s25, 1 }
   0x9   : > { %p1968_p4 = por %p167_p2, %p166_p1  ;;  %s151_s29 = ssub.s32 %s1880_s22, %s2212_s26 }
   0xa   : > { %p1589_p6 = scmp.ge.s32.totalorder %s1884_s23, 1  ;;  %p154_p7 = scmp.eq.s32.totalorder %s151_s29, 0 }
   0xb   : > { %p1975_p8 = por %p173_p5, %p172_p3  ;;  %p217_p9 = scmp.lt.s32.totalorder %s1884_s23, 3 }
   0xc   : > { %s1981_s6 = scalar_select %p154_p7, %s1872_s20, %s156_s27  }
   0xd   : > { %p218_p10 = pnand %p1589_p6, %p217_p9 }
   0xe   : > { %p251_p11 = scmp.lt.s32.totalorder (!%p218_p10), %s1876_s21, 1  ;;  %s1888_s29 = smov (!%p218_p10), 104  }
   0xf   : > { %221 = sbr.rel (%p218_p10) target bundleno = 1285 (0x505), region = 40  ;;  %s1889_s7 = smov (!%p218_p10), 120  }
  0x10   : > { %s1890_s8 = smov (!%p218_p10), 112   ;;  %s1891_s9 = smov (!%p218_p10), 96  }
  0x11   : > { %s1895_s15 = smov (!%p218_p10), 8   ;;  %s1896_s16 = smov (!%p218_p10), 24  }
  0x12   : > { %s1616_s25 = sshll.u32 (!%p218_p10), %s1876_s21, 7 }
  0x14   : > { %v1779_v0 = vld [vmem:[%s2201_s3] sm:$0xff]   ;;  %v1886_v1 = vmov 0.0   ;;  %v1780_v2 = vld [vmem:[%s2200_s2 + $0x8] sm:$0xff]   ;;  %vm1887_vm0 = vmmov 0   ;;  %s252_s13 = scalar_select %p251_p11, %s1876_s21, 1  ;;  %vm277_vm1 = vcmask 130048   ;;  %v336_v18 = vlaneseq }
  0x15   : > { %1643 = vmatprep.subr.bf16.mxu0 %v1886_v1  ;;  %1649 = vmatprep.subr.bf16.mxu1 %v1886_v1  ;;  %v1781_v3 = vld [vmem:[%s2200_s2] sm:$0xff]   ;;  %vm628_vm2 = vcmask 261120   ;;  %v1892_v16 = vmov 1983009808   ;;  %v1893_v19 = vmov 1934713408  }
  0x16   : > { %1644 = vmatpush3.bf16.msra.mxu0 %v1779_v0  ;;  %1645 = vmatprep.mubr.msk.bf16.mxu0 %vm1887_vm0, %v1886_v1  ;;  %s1591_s14 = sshll.u32 %s252_s13, 3  ;;  %v334_v17 = vunpack.c.l.s4 %v1892_v16  ;;  %v366_v20 = vunpack.c.l.s4 %v1893_v19  ;;  %v337_v22 = vshrl.u32 %v336_v18, 7  ;;  %vm530_vm3 = vcmask 59392   ;;  %s1897_s21 = smov [#allocation4]  }
  0x17   : > { %1650 = vmatpush3.bf16.msra.mxu1 %v1780_v2  ;;  %1653 = vmatprep.mubr.msk.bf16.mxu1 %vm1887_vm0, %v1886_v1  ;;  %s261_s17 = scalar_lea.vmem %s2199_s1, %s1591_s14  ;;  %s257_s27 = scalar_lea.vmem %s2198_s0, %s1591_s14  ;;  %vm830_vm4 = vcmask 64512   ;;  %vm1079_vm5 = vcmask 1042432   ;;  %vm1015_vm6 = vcmask 48128   ;;  %vm1424_vm7 = vcmask 195584  }
  0x18   : > { %1651 = vmatprep.subr.bf16.mxu1 %v1886_v1  ;;  %1657 = vmatprep.subr.bf16.mxu0 %v1886_v1  ;;  %v267_v4 = vld [vmem:[%s261_s17] sm:$0x3f]  ;;  %v335_v21 = vunpack.c.0.s8 %v334_v17  ;;  %v367_v25 = vunpack.c.0.s8 %v366_v20  ;;  %s1894_s14 = smov 16   ;;  %s248_s17 = sand.u32 1, %s1868_s19  }
  0x19   : > { %v610_v5 = vld [vmem:[%s257_s27] sm:$0xff]  ;;  %v268_v6 = vpack.c.bf16 %v267_v4, %v267_v4  ;;  %s1590_s24 = sshll.u32 %s248_s17, 3  ;;  %s1488_s10 = scalar_lea.sflag [#allocation5], %s248_s17 }
  0x1a   : > { %v611_v7 = vpack.c.bf16 %v610_v5, %v610_v5  ;;  %v2015_v26 = vsub.s32 %v335_v21, %v337_v22  ;;  %v2017_v33 = vsub.s32 %v367_v25, %v337_v22  ;;  %s250_s27 = scalar_lea.vmem [#allocation4], %s1590_s24  ;;  %s1812_s12 = sshll.u32 %s1897_s21, 4  ;;  %s1813_s12 = int_to_ptr.vmem [resolvable:$false] %s1812_s12 }
  0x1b   : > { %1652 = vmatpush3.bf16.msra.mxu1 %v1781_v3  ;;  %1646 = vmatmul.mubr.msk.bf16.vlgmr.msra.gmra.mxu0 %vm277_vm1, %v268_v6  ;;  %s1814_s13 = scalar_lea.vmem %s1813_s12, 256 }
  0x1c   : > { %1663 = vmatprep.subr.bf16.mxu1 %v1886_v1  ;;  %1659 = vmatprep.mubr.msk.bf16.mxu0 %vm1887_vm0, %v1886_v1 }
  0x1e   : > { %1654 = vmatmul.mubr.msk.bf16.vlgmr.msra.gmra.mxu1 %vm628_vm2, %v611_v7 }
  0x1f   : > { %1665 = vmatprep.mubr.msk.bf16.mxu1 %vm1887_vm0, %v1886_v1 }
  0xdb   : > { %v315_v8 = vpop.f32.mrf.mxu0 }
  0xdc   : > { %328 = vrot.lane.b32.xlu1 %v315_v8, %s1888_s29  ;;  %322 = vrot.lane.b32.xlu0 %v315_v8, %s1889_s7 }
  0xdd   : > { %v1647_v10 = vpop.f32.mrf.mxu0 }
  0xde   : > { %v666_v9 = vpop.f32.mrf.mxu1 }
  0xdf   : > { %v318_v12 = vpop.f32.mrf.mxu0 }
  0xe0   : > { %v1655_v11 = vpop.f32.mrf.mxu1  ;;  %325 = vrot.lane.b32.xlu0 %v315_v8, %s1890_s8  ;;  %673 = vrot.lane.b32.xlu1 %v666_v9, %s1889_s7 }
  0xe1   : > { %v1648_v14 = vpop.f32.mrf.mxu0 }
  0xe2   : > { %v669_v13 = vpop.f32.mrf.mxu1 }
  0xe4   : > { %v1656_v15 = vpop.f32.mrf.mxu1  ;;  %676 = vrot.lane.b32.xlu0 %v666_v9, %s1890_s8  ;;  %679 = vrot.lane.b32.xlu1 %v666_v9, %s1888_s29  ;;  %s1502_s29 = sshll.u32 %s250_s27, 4  ;;  %s2153_s29 = int_to_ptr.vmem [resolvable:$true] %s1502_s29 }
  0xe5   : > { %s1808_s11 = scalar_lea.vmem %s2153_s29, 128  ;;  %p1815_p1 = scmp.lt.s32.totalorder %s2153_s29, %s1813_s12 }
  0xe6   : > { %p1809_p12 = scmp.ne.s32.totalorder %s2153_s29, %s1808_s11  ;;  %p1816_p2 = scmp.lt.s32.totalorder %s1814_s13, %s1808_s11 }
  0xe8   : > { %389 = vrot.lane.b32.xlu0 %v315_v8, %s1891_s9  ;;  %p1810_p13 = pnand %p1809_p12, %p1968_p4  ;;  %p1817_p3 = por %p1816_p2, %p1815_p1 }
  0xea   : > { %p1811_p0 = pneg %p1810_p13 }
  0xec   : > { %p1818_p5 = pnand %p1817_p3, %p1811_p0 }
 0x14e   : > { %v329_v23 = vpop.permute.xlu1 %328  ;;  %v323_v24 = vpop.permute.xlu0 %322 }
 0x14f   : > { %391 = vrot.lane.b32.xlu1 %v323_v24, %s1891_s9  ;;  %v347_v27 = vcombine.low %v323_v24, %v329_v23  ;;  %v348_v28 = vcombine.high %v323_v24, %v329_v23 }
 0x151   : > { %v355_v34 = vrot.slane %v347_v27, %v2015_v26  ;;  %v362_v35 = vrot.slane %v348_v28, %v2015_v26 }
 0x152   : > { %v326_v29 = vpop.permute.xlu0 %325  ;;  %v674_v30 = vpop.permute.xlu1 %673 }
 0x153   : > { %v331_v31 = vcombine.low %v315_v8, %v326_v29  ;;  %v332_v32 = vcombine.high %v315_v8, %v326_v29  ;;  %393 = vrot.lane.b32.xlu0 %v326_v29, %s1891_s9  ;;  %395 = vrot.lane.b32.xlu1 %v329_v23, %s1891_s9  ;;  %s2151_s9 = scalar_lea.hbm %s2203_s5, %s1616_s25 }
 0x155   : > { %v339_v36 = vrot.slane %v331_v31, %v2015_v26  ;;  %v346_v37 = vrot.slane %v332_v32, %v2015_v26 }
 0x156   : > { %v677_v38 = vpop.permute.xlu0 %676  ;;  %v680_v39 = vpop.permute.xlu1 %679 }
 0x157   : > { %v363_v40 = vcombine.low %v339_v36, %v355_v34  ;;  %v364_v41 = vcombine.high %v339_v36, %v355_v34  ;;  %v379_v42 = vcombine.low %v346_v37, %v362_v35  ;;  %v682_v43 = vcombine.low %v666_v9, %v677_v38 }
 0x158   : > { %v683_v44 = vcombine.high %v666_v9, %v677_v38  ;;  %v698_v45 = vcombine.low %v674_v30, %v680_v39  ;;  %v699_v46 = vcombine.high %v674_v30, %v680_v39 }
 0x159   : > { %v371_v47 = vrot.slane %v363_v40, %v2017_v33  ;;  %v378_v48 = vrot.slane %v364_v41, %v2017_v33  ;;  %v386_v49 = vrot.slane %v379_v42, %v2017_v33  ;;  %v690_v50 = vrot.slane %v682_v43, %v2015_v26 }
 0x15a   : > { %v697_v51 = vrot.slane %v683_v44, %v2015_v26  ;;  %v706_v52 = vrot.slane %v698_v45, %v2015_v26  ;;  %v713_v53 = vrot.slane %v699_v46, %v2015_v26 }
 0x15b   : > { %v459_v54 = vcombine.low %v371_v47, %v378_v48  ;;  %v1595_v55 = vcombine.high %v371_v47, %v378_v48  ;;  %v482_v56 = vcombine.high %v386_v49, %v1886_v1  ;;  %v481_v63 = vrot.slane %v386_v49, %v2015_v26 }
 0x15c   : > { %v714_v57 = vcombine.low %v690_v50, %v706_v52  ;;  %v715_v58 = vcombine.high %v690_v50, %v706_v52  ;;  %v730_v59 = vcombine.low %v697_v51, %v713_v53  ;;  %v731_v60 = vcombine.high %v697_v51, %v713_v53 }
 0x15d   : > { %v466_v61 = vrot.slane %v459_v54, %v2015_v26  ;;  %v474_v62 = vrot.slane %v1595_v55, %v2015_v26  ;;  %v489_v0 = vrot.slane %v482_v56, %v2015_v26  ;;  %v390_v56 = vpop.permute.xlu0 %389 }
 0x15e   : > { %v722_v2 = vrot.slane %v714_v57, %v2017_v33  ;;  %v729_v3 = vrot.slane %v715_v58, %v2017_v33  ;;  %v738_v4 = vrot.slane %v730_v59, %v2017_v33  ;;  %v745_v5 = vrot.slane %v731_v60, %v2017_v33 }
 0x15f   : > { %v490_v6 = vcombine.low %v466_v61, %v474_v62  ;;  %v491_v7 = vcombine.high %v466_v61, %v474_v62  ;;  %v506_v8 = vcombine.low %v481_v63, %v489_v0  ;;  %v507_v9 = vcombine.high %v481_v63, %v489_v0 }
 0x160   : > { %v750_v10 = vcombine.low %v722_v2, %v729_v3  ;;  %v1600_v11 = vcombine.high %v722_v2, %v729_v3  ;;  %v766_v12 = vcombine.low %v738_v4, %v745_v5  ;;  %v1601_v13 = vcombine.high %v738_v4, %v745_v5 }
 0x161   : > { %v498_v14 = vrot.slane %v490_v6, %v2017_v33  ;;  %v505_v15 = vrot.slane %v491_v7, %v2017_v33  ;;  %v514_v16 = vrot.slane %v506_v8, %v2017_v33  ;;  %v521_v17 = vrot.slane %v507_v9, %v2017_v33 }
 0x162   : > { %v757_v22 = vrot.slane %v750_v10, %v2015_v26  ;;  %v765_v23 = vrot.slane %v1600_v11, %v2015_v26  ;;  %v773_v24 = vrot.slane %v766_v12, %v2015_v26  ;;  %v781_v25 = vrot.slane %v1601_v13, %v2015_v26 }
 0x163   : > { %v522_v18 = vcombine.low %v498_v14, %v514_v16  ;;  %v523_v19 = vcombine.high %v498_v14, %v514_v16  ;;  %v524_v20 = vcombine.low %v505_v15, %v521_v17  ;;  %v525_v21 = vcombine.high %v505_v15, %v521_v17 }
 0x164   : > { %v782_v31 = vcombine.low %v757_v22, %v765_v23  ;;  %v798_v32 = vcombine.low %v773_v24, %v781_v25  ;;  %v783_v40 = vcombine.high %v757_v22, %v765_v23  ;;  %v799_v41 = vcombine.high %v773_v24, %v781_v25 }
 0x165   : > { %v526_v27 = vpack.c.bf16 %v522_v18, %v522_v18  ;;  %v527_v28 = vpack.c.bf16 %v523_v19, %v523_v19  ;;  %v528_v29 = vpack.c.bf16 %v524_v20, %v524_v20  ;;  %v529_v30 = vpack.c.bf16 %v525_v21, %v525_v21 }
 0x166   : > { %v790_v34 = vrot.slane %v782_v31, %v2017_v33  ;;  %v806_v35 = vrot.slane %v798_v32, %v2017_v33  ;;  %v797_v48 = vrot.slane %v783_v40, %v2017_v33  ;;  %v813_v49 = vrot.slane %v799_v41, %v2017_v33 }
 0x167   : > { %531 = vst.msk [vmem:[#allocation2] sm:$0x7] %vm530_vm3, %v526_v27  ;;  %532 = vst.msk [vmem:[#allocation2 + $0x4] sm:$0x7] %vm530_vm3, %v527_v28 }
 0x168   : > { %533 = vst.msk [vmem:[#allocation2 + $0x8] sm:$0x7] %vm530_vm3, %v528_v29  ;;  %534 = vst.msk [vmem:[#allocation2 + $0xc] sm:$0x7] %vm530_vm3, %v529_v30  ;;  %v814_v42 = vcombine.low %v790_v34, %v806_v35  ;;  %v815_v43 = vcombine.high %v790_v34, %v806_v35  ;;  %v816_v52 = vcombine.low %v797_v48, %v813_v49 }
 0x169   : > { %v817_v53 = vcombine.high %v797_v48, %v813_v49 }
 0x16a   : > { %v818_v46 = vpack.c.bf16 %v814_v42, %v814_v42  ;;  %v819_v47 = vpack.c.bf16 %v815_v43, %v815_v43  ;;  %v820_v54 = vpack.c.bf16 %v816_v52, %v816_v52 }
 0x16b   : > { %v821_v55 = vpack.c.bf16 %v817_v53, %v817_v53 }
 0x16e   : > { %v822_v36 = vld [vmem:[#allocation2] sm:$0x7]  ;;  %v823_v37 = vld [vmem:[#allocation2 + $0x4] sm:$0x7] }
 0x16f   : > { %v835_v38 = vsel %vm830_vm4, %v822_v36, 0  ;;  %v881_v39 = vsel %vm830_vm4, %v823_v37, 0  ;;  %v824_v44 = vld [vmem:[#allocation2 + $0x8] sm:$0x7]  ;;  %v825_v45 = vld [vmem:[#allocation2 + $0xc] sm:$0x7] }
 0x170   : > { %1658 = vmatpush3.bf16.xpose.msra.mxu0 %v835_v38  ;;  %1664 = vmatpush3.bf16.xpose.msra.mxu1 %v881_v39  ;;  %v927_v50 = vsel %vm830_vm4, %v824_v44, 0  ;;  %v973_v51 = vsel %vm830_vm4, %v825_v45, 0 }
 0x171   : > { %1669 = vmatprep.subr.bf16.mxu0 %v1886_v1  ;;  %1675 = vmatprep.subr.bf16.mxu1 %v1886_v1 }
 0x177   : > { %1660 = vmatmul.mubr.msk.bf16.vlgmr.msra.gmra.mxu0 %vm830_vm4, %v818_v46  ;;  %1666 = vmatmul.mubr.msk.bf16.vlgmr.msra.gmra.mxu1 %vm830_vm4, %v819_v47 }
 0x178   : > { %1670 = vmatpush3.bf16.xpose.msra.mxu0 %v927_v50  ;;  %1676 = vmatpush3.bf16.xpose.msra.mxu1 %v973_v51 }
 0x179   : > { %1671 = vmatprep.mubr.msk.bf16.mxu0 %vm1887_vm0, %v1886_v1  ;;  %1677 = vmatprep.mubr.msk.bf16.mxu1 %vm1887_vm0, %v1886_v1 }
 0x17a   : > { %1681 = vmatprep.subr.bf16.mxu0 %v1886_v1  ;;  %1687 = vmatprep.subr.bf16.mxu1 %v1886_v1 }
 0x17f   : > { %1672 = vmatmul.mubr.msk.bf16.vlgmr.msra.gmra.mxu0 %vm830_vm4, %v820_v54  ;;  %1678 = vmatmul.mubr.msk.bf16.vlgmr.msra.gmra.mxu1 %vm830_vm4, %v821_v55 }
 0x180   : > { %1683 = vmatprep.mubr.msk.bf16.mxu0 %vm1887_vm0, %v1886_v1  ;;  %1689 = vmatprep.mubr.msk.bf16.mxu1 %vm1887_vm0, %v1886_v1 }
 0x1c1   : > { %v392_v57 = vpop.permute.xlu1 %391 }
 0x1c5   : > { %v394_v58 = vpop.permute.xlu0 %393  ;;  %v396_v59 = vpop.permute.xlu1 %395 }
 0x1c6   : > { %v401_v60 = vcombine.low %v390_v56, %v394_v58  ;;  %v402_v61 = vcombine.high %v390_v56, %v394_v58  ;;  %v417_v62 = vcombine.low %v392_v57, %v396_v59  ;;  %v418_v63 = vcombine.high %v392_v57, %v396_v59 }
 0x1c8   : > { %v409_v0 = vrot.slane %v401_v60, %v2015_v26  ;;  %v416_v2 = vrot.slane %v402_v61, %v2015_v26  ;;  %v425_v3 = vrot.slane %v417_v62, %v2015_v26  ;;  %v432_v4 = vrot.slane %v418_v63, %v2015_v26 }
 0x1ca   : > { %v433_v5 = vcombine.low %v409_v0, %v425_v3  ;;  %v434_v6 = vcombine.high %v409_v0, %v425_v3  ;;  %v449_v7 = vcombine.low %v416_v2, %v432_v4 }
 0x1cc   : > { %v441_v8 = vrot.slane %v433_v5, %v2017_v33  ;;  %v448_v9 = vrot.slane %v434_v6, %v2017_v33  ;;  %v456_v10 = vrot.slane %v449_v7, %v2017_v33 }
 0x1ce   : > { %v535_v11 = vcombine.low %v441_v8, %v448_v9  ;;  %v1596_v12 = vcombine.high %v441_v8, %v448_v9  ;;  %v558_v13 = vcombine.high %v456_v10, %v1886_v1  ;;  %v557_v16 = vrot.slane %v456_v10, %v2015_v26 }
 0x1d0   : > { %v542_v14 = vrot.slane %v535_v11, %v2015_v26  ;;  %v550_v15 = vrot.slane %v1596_v12, %v2015_v26  ;;  %v565_v17 = vrot.slane %v558_v13, %v2015_v26 }
 0x1d2   : > { %v566_v18 = vcombine.low %v542_v14, %v550_v15  ;;  %v567_v19 = vcombine.high %v542_v14, %v550_v15  ;;  %v582_v20 = vcombine.low %v557_v16, %v565_v17  ;;  %v583_v21 = vcombine.high %v557_v16, %v565_v17 }
 0x1d4   : > { %v574_v22 = vrot.slane %v566_v18, %v2017_v33  ;;  %v581_v23 = vrot.slane %v567_v19, %v2017_v33  ;;  %v590_v24 = vrot.slane %v582_v20, %v2017_v33  ;;  %v597_v25 = vrot.slane %v583_v21, %v2017_v33 }
 0x1d6   : > { %v598_v27 = vcombine.low %v574_v22, %v590_v24  ;;  %v599_v28 = vcombine.high %v574_v22, %v590_v24  ;;  %v600_v29 = vcombine.low %v581_v23, %v597_v25  ;;  %v601_v30 = vcombine.high %v581_v23, %v597_v25 }
 0x1d8   : > { %v602_v31 = vpack.c.bf16 %v598_v27, %v598_v27  ;;  %v603_v32 = vpack.c.bf16 %v599_v28, %v599_v28  ;;  %v604_v34 = vpack.c.bf16 %v600_v29, %v600_v29  ;;  %v605_v35 = vpack.c.bf16 %v601_v30, %v601_v30 }
 0x1da   : > { %606 = vst.msk [vmem:[#allocation3] sm:$0x7] %vm530_vm3, %v602_v31  ;;  %607 = vst.msk [vmem:[#allocation3 + $0x4] sm:$0x7] %vm530_vm3, %v603_v32 }
 0x1db   : > { %608 = vst.msk [vmem:[#allocation3 + $0x8] sm:$0x7] %vm530_vm3, %v604_v34  ;;  %609 = vst.msk [vmem:[#allocation3 + $0xc] sm:$0x7] %vm530_vm3, %v605_v35 }
 0x1e1   : > { %v826_v36 = vld [vmem:[#allocation3] sm:$0x7]  ;;  %v827_v37 = vld [vmem:[#allocation3 + $0x4] sm:$0x7] }
 0x1e2   : > { %v1081_v38 = vsel %vm1079_vm5, %v826_v36, 0  ;;  %v1127_v39 = vsel %vm1079_vm5, %v827_v37, 0  ;;  %v828_v10 = vld [vmem:[#allocation3 + $0x8] sm:$0x7]  ;;  %v829_v14 = vld [vmem:[#allocation3 + $0xc] sm:$0x7] }
 0x1e3   : > { %1682 = vmatpush3.bf16.msra.mxu0 %v1081_v38  ;;  %1688 = vmatpush3.bf16.msra.mxu1 %v1127_v39  ;;  %v1173_v17 = vsel %vm1079_vm5, %v828_v10, 0  ;;  %v1219_v18 = vsel %vm1079_vm5, %v829_v14, 0 }
 0x1e4   : > { %1693 = vmatprep.subr.bf16.mxu0 %v1886_v1  ;;  %1699 = vmatprep.subr.bf16.mxu1 %v1886_v1 }
 0x237   : > { %v871_v40 = vpop.f32.mrf.mxu0  ;;  %v917_v41 = vpop.f32.mrf.mxu1 }
 0x238   : > { %v1016_v42 = vsel %vm1015_vm6, %v871_v40, -inf  ;;  %v1019_v43 = vsel %vm1015_vm6, %v917_v41, -inf }
 0x239   : > { %1017 = vmax.xlane.f32.xlu0 %v1016_v42  ;;  %v1661_v44 = vpop.f32.mrf.mxu0  ;;  %1020 = vmax.xlane.f32.xlu1 %v1019_v43  ;;  %v1667_v45 = vpop.f32.mrf.mxu1 }
 0x23b   : > { %v874_v46 = vpop.f32.mrf.mxu0  ;;  %v920_v47 = vpop.f32.mrf.mxu1 }
 0x23d   : > { %v1662_v48 = vpop.f32.mrf.mxu0  ;;  %v1668_v49 = vpop.f32.mrf.mxu1 }
 0x23f   : > { %v963_v50 = vpop.f32.mrf.mxu0  ;;  %v1009_v51 = vpop.f32.mrf.mxu1 }
 0x240   : > { %v1022_v52 = vsel %vm1015_vm6, %v963_v50, -inf  ;;  %v1025_v57 = vsel %vm1015_vm6, %v1009_v51, -inf }
 0x241   : > { %1023 = vmax.xlane.f32.xlu0 %v1022_v52  ;;  %v1673_v53 = vpop.f32.mrf.mxu0  ;;  %v1679_v54 = vpop.f32.mrf.mxu1 }
 0x243   : > { %v966_v55 = vpop.f32.mrf.mxu0  ;;  %v1012_v56 = vpop.f32.mrf.mxu1 }
 0x245   : > { %v1674_v58 = vpop.f32.mrf.mxu0  ;;  %1026 = vmax.xlane.f32.xlu0 %v1025_v57  ;;  %v1680_v59 = vpop.f32.mrf.mxu1 }
 0x2c2   : > { %v1018_v60 = vpop.xlane.xlu0 %1017  ;;  %v1021_v61 = vpop.xlane.xlu1 %1020 }
 0x2c3   : > { %v1040_v62 = vsub.f32 %v871_v40, %v1018_v60  ;;  %v1041_v63 = vsub.f32 %v917_v41, %v1021_v61  ;;  %v1028_v25 = vsub.f32 -inf, %v1018_v60  ;;  %v1029_v29 = vsub.f32 -inf, %v1021_v61 }
 0x2c5   : > { %v1044_v0 = vmul.f32 1.442695, %v1040_v62  ;;  %v1046_v2 = vmul.f32 1.442695, %v1041_v63  ;;  %v1032_v28 = vmul.f32 1.442695, %v1028_v25 }
 0x2c6   : > { %v1034_v32 = vmul.f32 1.442695, %v1029_v29  ;;  %v1782_v29 = vld [vmem:[%s2202_s4 + $0x8] sm:$0xff]  }
 0x2c7   : > { %1784 = vpow2.f32 %v1044_v0 }
 0x2c8   : > { %1786 = vpow2.f32 %v1046_v2 }
 0x2ca   : > { %v1024_v3 = vpop.xlane.xlu0 %1023 }
 0x2cb   : > { %v1042_v4 = vsub.f32 %v963_v50, %v1024_v3  ;;  %v1030_v27 = vsub.f32 -inf, %v1024_v3 }
 0x2cd   : > { %v1048_v5 = vmul.f32 1.442695, %v1042_v4  ;;  %v1036_v30 = vmul.f32 1.442695, %v1030_v27 }
 0x2ce   : > { %v1027_v6 = vpop.xlane.xlu0 %1026 }
 0x2cf   : > { %v1043_v7 = vsub.f32 %v1009_v51, %v1027_v6  ;;  %1788 = vpow2.f32 %v1048_v5  ;;  %v1031_v31 = vsub.f32 -inf, %v1027_v6 }
 0x2d1   : > { %v1050_v8 = vmul.f32 1.442695, %v1043_v7  ;;  %v1038_v34 = vmul.f32 1.442695, %v1031_v31 }
 0x2d3   : > { %1790 = vpow2.f32 %v1050_v8 }
 0x2d4   : > { %v1785_v9 = vpop.eup %1784  ;;  %1792 = vpow2.f32 %v1032_v28 }
 0x2d5   : > { %v1056_v11 = vsel %vm1015_vm6, %v1785_v9, 0.0  ;;  %v1072_v12 = vpack.c.bf16 %v1785_v9, %v1785_v9  ;;  %v1787_v13 = vpop.eup %1786  ;;  %1794 = vpow2.f32 %v1036_v30 }
 0x2d6   : > { %1057 = vadd.xlane.f32.xlu1 %v1056_v11  ;;  %v1059_v15 = vsel %vm1015_vm6, %v1787_v13, 0.0  ;;  %v1073_v16 = vpack.c.bf16 %v1787_v13, %v1787_v13  ;;  %1796 = vpow2.f32 %v1034_v32 }
 0x2d7   : > { %1684 = vmatmul.mubr.msk.bf16.vlgmr.msra.gmra.mxu0 %vm1015_vm6, %v1072_v12  ;;  %1060 = vadd.xlane.f32.xlu0 %v1059_v15  ;;  %1798 = vpow2.f32 %v1038_v34 }
 0x2d8   : > { %1694 = vmatpush3.bf16.msra.mxu0 %v1173_v17  ;;  %1690 = vmatmul.mubr.msk.bf16.vlgmr.msra.gmra.mxu1 %vm1015_vm6, %v1073_v16 }
 0x2d9   : > { %1695 = vmatprep.mubr.msk.bf16.mxu0 %vm1887_vm0, %v1886_v1  ;;  %1700 = vmatpush3.bf16.msra.mxu1 %v1219_v18 }
 0x2da   : > { %1701 = vmatprep.mubr.msk.bf16.mxu1 %vm1887_vm0, %v1886_v1  ;;  %1705 = vmatprep.subr.bf16.mxu0 %v1886_v1 }
 0x2dc   : > { %v1789_v19 = vpop.eup %1788 }
 0x2dd   : > { %v1062_v20 = vsel %vm1015_vm6, %v1789_v19, 0.0  ;;  %v1074_v21 = vpack.c.bf16 %v1789_v19, %v1789_v19 }
 0x2de   : > { %1063 = vadd.xlane.f32.xlu1 %v1062_v20 }
 0x2df   : > { %1696 = vmatmul.mubr.msk.bf16.vlgmr.msra.gmra.mxu0 %vm1015_vm6, %v1074_v21 }
 0x2e0   : > { %v1791_v22 = vpop.eup %1790  ;;  %1709 = vmatprep.mubr.msk.bf16.mxu0 %vm1887_vm0, %v1886_v1  ;;  %1706 = vmatpush3.bf16.msra.mxu0 %v1782_v29 }
 0x2e1   : > { %v1065_v23 = vsel %vm1015_vm6, %v1791_v22, 0.0  ;;  %v1075_v24 = vpack.c.bf16 %v1791_v22, %v1791_v22  ;;  %v1793_v36 = vpop.eup %1792  ;;  %1707 = vmatprep.subr.bf16.mxu0 %v1886_v1 }
 0x2e2   : > { %1066 = vadd.xlane.f32.xlu0 %v1065_v23  ;;  %v1795_v37 = vpop.eup %1794  ;;  %v1052_v38 = vmul.f32 0.0, %v1793_v36 }
 0x2e3   : > { %1702 = vmatmul.mubr.msk.bf16.vlgmr.msra.gmra.mxu1 %vm1015_vm6, %v1075_v24  ;;  %v1797_v41 = vpop.eup %1796  ;;  %v1054_v42 = vmul.f32 0.0, %v1795_v37 }
 0x2e4   : > { %v1799_v43 = vpop.eup %1798  ;;  %v1053_v46 = vmul.f32 0.0, %v1797_v41 }
 0x2e5   : > { %v1055_v48 = vmul.f32 0.0, %v1799_v43  ;;  %v1783_v43 = vld [vmem:[%s2202_s4] sm:$0xff]  }
 0x2e6   : > { %1708 = vmatpush3.bf16.msra.mxu0 %v1783_v43 }
 0x35f   : > { %v1058_v35 = vpop.xlane.xlu1 %1057 }
 0x360   : > { %v1061_v39 = vpop.xlane.xlu0 %1060  ;;  %v1068_v44 = vadd.f32 %v1058_v35, %v1052_v38 }
 0x361   : > { %v1069_v49 = vadd.f32 %v1061_v39, %v1053_v46 }
 0x362   : > { %1800 = vrcp.f32 %v1068_v44 }
 0x367   : > { %v1064_v40 = vpop.xlane.xlu1 %1063 }
 0x368   : > { %v1070_v45 = vadd.f32 %v1064_v40, %v1054_v42 }
 0x36a   : > { %1802 = vrcp.f32 %v1070_v45 }
 0x36b   : > { %v1067_v47 = vpop.xlane.xlu0 %1066  ;;  %1804 = vrcp.f32 %v1069_v49 }
 0x36c   : > { %v1071_v50 = vadd.f32 %v1067_v47, %v1055_v48 }
 0x36e   : > { %1806 = vrcp.f32 %v1071_v50 }
 0x36f   : > { %v1801_v61 = vpop.eup %1800 }
 0x377   : > { %v1803_v63 = vpop.eup %1802 }
 0x378   : > { %v1805_v7 = vpop.eup %1804 }
 0x37b   : > { %v1807_v11 = vpop.eup %1806 }
 0x397   : > { %v1117_v51 = vpop.f32.mrf.mxu0 }
 0x398   : > { %v1163_v52 = vpop.f32.mrf.mxu1  ;;  %v1261_v58 = vadd.f32 %v1117_v51, %v1052_v38 }
 0x399   : > { %v1685_v53 = vpop.f32.mrf.mxu0  ;;  %v1262_v3 = vadd.f32 %v1163_v52, %v1053_v46 }
 0x39a   : > { %v1691_v54 = vpop.f32.mrf.mxu1  ;;  %v1269_v2 = vmul.f32 %v1801_v61, %v1261_v58 }
 0x39b   : > { %v1120_v55 = vpop.f32.mrf.mxu0  ;;  %v1270_v14 = vmul.f32 %v1805_v7, %v1262_v3 }
 0x39c   : > { %v1166_v56 = vpop.f32.mrf.mxu1 }
 0x39d   : > { %v1686_v57 = vpop.f32.mrf.mxu0 }
 0x39e   : > { %v1692_v59 = vpop.f32.mrf.mxu1 }
 0x39f   : > { %v1209_v60 = vpop.f32.mrf.mxu0 }
 0x3a0   : > { %v1263_v62 = vadd.f32 %v1209_v60, %v1054_v42 }
 0x3a1   : > { %v1697_v0 = vpop.f32.mrf.mxu0 }
 0x3a2   : > { %v1271_v4 = vmul.f32 %v1803_v63, %v1263_v62 }
 0x3a3   : > { %v1212_v5 = vpop.f32.mrf.mxu0  ;;  %v1255_v6 = vpop.f32.mrf.mxu1 }
 0x3a4   : > { %v1273_v8 = vcombine.low %v1269_v2, %v1271_v4  ;;  %v1274_v9 = vcombine.high %v1269_v2, %v1271_v4  ;;  %v1264_v10 = vadd.f32 %v1255_v6, %v1055_v48 }
 0x3a5   : > { %v1698_v12 = vpop.f32.mrf.mxu0  ;;  %v1703_v13 = vpop.f32.mrf.mxu1 }
 0x3a6   : > { %v1272_v15 = vmul.f32 %v1807_v11, %v1264_v10  ;;  %v1281_v20 = vrot.slane %v1273_v8, %v2015_v26  ;;  %v1288_v21 = vrot.slane %v1274_v9, %v2015_v26 }
 0x3a7   : > { %v1258_v16 = vpop.f32.mrf.mxu1 }
 0x3a8   : > { %v1289_v17 = vcombine.low %v1270_v14, %v1272_v15  ;;  %v1290_v18 = vcombine.high %v1270_v14, %v1272_v15 }
 0x3a9   : > { %v1704_v19 = vpop.f32.mrf.mxu1 }
 0x3aa   : > { %v1297_v22 = vrot.slane %v1289_v17, %v2015_v26  ;;  %v1304_v23 = vrot.slane %v1290_v18, %v2015_v26 }
 0x3ac   : > { %v1305_v24 = vcombine.low %v1281_v20, %v1297_v22  ;;  %v1306_v25 = vcombine.high %v1281_v20, %v1297_v22  ;;  %v1321_v27 = vcombine.low %v1288_v21, %v1304_v23  ;;  %v1322_v28 = vcombine.high %v1288_v21, %v1304_v23 }
 0x3ae   : > { %v1313_v30 = vrot.slane %v1305_v24, %v2017_v33  ;;  %v1320_v31 = vrot.slane %v1306_v25, %v2017_v33  ;;  %v1329_v32 = vrot.slane %v1321_v27, %v2017_v33  ;;  %v1336_v34 = vrot.slane %v1322_v28, %v2017_v33 }
 0x3b0   : > { %v1341_v35 = vcombine.low %v1313_v30, %v1320_v31  ;;  %v1610_v36 = vcombine.high %v1313_v30, %v1320_v31  ;;  %v1357_v37 = vcombine.low %v1329_v32, %v1336_v34  ;;  %v1611_v38 = vcombine.high %v1329_v32, %v1336_v34 }
 0x3b2   : > { %v1348_v39 = vrot.slane %v1341_v35, %v2015_v26  ;;  %v1356_v40 = vrot.slane %v1610_v36, %v2015_v26  ;;  %v1364_v41 = vrot.slane %v1357_v37, %v2015_v26  ;;  %v1372_v42 = vrot.slane %v1611_v38, %v2015_v26 }
 0x3b4   : > { %v1374_v44 = vcombine.high %v1348_v39, %v1356_v40  ;;  %v1390_v45 = vcombine.high %v1364_v41, %v1372_v42  ;;  %v1373_v46 = vcombine.low %v1348_v39, %v1356_v40  ;;  %v1389_v47 = vcombine.low %v1364_v41, %v1372_v42 }
 0x3b6   : > { %v1388_v48 = vrot.slane %v1374_v44, %v2017_v33  ;;  %v1404_v1 = vrot.slane %v1390_v45, %v2017_v33  ;;  %v1381_v49 = vrot.slane %v1373_v46, %v2017_v33  ;;  %v1397_v50 = vrot.slane %v1389_v47, %v2017_v33 }
 0x3b8   : > { %v1407_v51 = vcombine.low %v1388_v48, %v1404_v1  ;;  %v1406_v52 = vcombine.high %v1381_v49, %v1397_v50  ;;  %v1408_v26 = vcombine.high %v1388_v48, %v1404_v1  ;;  %v1405_v53 = vcombine.low %v1381_v49, %v1397_v50 }
 0x3ba   : > { %1414 = vrot.lane.b32.xlu0 %v1407_v51, %s1894_s14  ;;  %1410 = vrot.lane.b32.xlu1 %v1406_v52, %s1895_s15 }
 0x3be   : > { %1418 = vrot.lane.b32.xlu1 %v1408_v26, %s1896_s16 }
 0x42c   : > { %v1411_v54 = vpop.permute.xlu1 %1410  ;;  %v1415_v55 = vpop.permute.xlu0 %1414 }
 0x42d   : > { %v1421_v56 = vsel %vm830_vm4, %v1405_v53, %v1411_v54 }
 0x42e   : > { %v1423_v33 = vsel %vm277_vm1, %v1421_v56, %v1415_v55 }
 0x430   : > { %v1419_v57 = vpop.permute.xlu1 %1418 }
 0x431   : > { %v1425_v58 = vsel %vm1424_vm7, %v1423_v33, %v1419_v57 }
 0x432   : > { %v1426_v59 = vpack.c.bf16 %v1425_v58, %v1425_v58 }
 0x434   : > { %1710 = vmatmul.mubr.msk.bf16.vlgmr.msra.gmra.mxu0 %vm628_vm2, %v1426_v59 }
 0x4f4   : > { %v1480_v60 = vpop.f32.mrf.mxu0 }
 0x4f5   : > { %1486 = vst.msk [vmem:[%s250_s27] sm:$0xff] %vm628_vm2, %v1480_v60 }
 0x4f6   : > { %v1711_v61 = vpop.f32.mrf.mxu0 }
 0x4f7   : > { %1821 = shalt.err (!%p1818_p5)
}
 0x4f8   : > { %s1822_s14 = scalar_lea.hbm %s2151_s9, 128  ;;  %s1826_s17 = scalar_lea.hbm %s2203_s5, 256 }
 0x4f9   : > { %p1823_p6 = scmp.ne.s32.totalorder %s2151_s9, %s1822_s14  ;;  %p1827_p10 = scmp.lt.s32.totalorder %s2151_s9, %s2203_s5 }
 0x4fa   : > { %p1828_p11 = scmp.lt.s32.totalorder %s1826_s17, %s1822_s14 }
 0x4fb   : > { %p1824_p7 = pnand %p1823_p6, %p1968_p4 }
 0x4fc   : > { %p1829_p12 = por %p1828_p11, %p1827_p10 }
 0x4fd   : > { %p1825_p9 = pneg %p1824_p7 }
 0x4ff   : > { %p1830_p13 = pnand %p1829_p12, %p1825_p9 }
 0x501   : > { %1833 = shalt.err (!%p1830_p13)
}
 0x502   : > { %1713 = dma.vmem_to_hbm [thread:$0]  (%p1968_p4), %s2153_s29, 128, %s2151_s9, %s1488_s10   ;;  %v1483_v62 = vpop.f32.mrf.mxu0 }
 0x504   : > { %v1712_v63 = vpop.f32.mrf.mxu0 }
 0x505 PF: > { %p1719_p0 = scmp.ge.s32.totalorder %s1884_s23, 2  ;;  %s1514_s27 = sand.u32 1, %s1864_s18  }
 0x506   : > { %s1515_s7 = scalar_lea.sflag [#allocation5], %s1514_s27 }
 0x507   : > { %p1716_p1 = pnand %p1719_p0, %p1975_p8 }
 0x509   : > { %p1717_p2 = pneg %p1716_p1 }
 0x50b   : > { %1859 = dma.done.wait (%p1717_p2), %s1515_s7, 128  }
 0x50c   : > { %1861 = vsyncadd (%p1717_p2), %s1515_s7, 4294967168  ;;  %s18_s23 = sadd.s32 1, %s1884_s23   ;;  %s2206_s18 = smov %s1868_s19 }
 0x50d   : > { %p15_p3 = scmp.ge.s32.totalorder %s18_s23, 4   ;;  %s2207_s19 = smov %s1872_s20 }
 0x50e   : > { %s2208_s20 = smov %s1981_s6  ;;  %s2209_s21 = smov %s1880_s22 }
 0x50f   : > { %s2210_s22 = smov %s2212_s26  ;;  %17 = sbr.rel (!%p15_p3) target bundleno = 4 (0x4), region = 82 }
 0x514   :  { %1520 = vsyncpa [#allocation5], 1 }
 0x515   :  { %1522 = vsyncpa [#allocation5 + $0x1], 1 }

</bundles_post_ra>
